<compile_context>
chip_gen: v7x
topology: tpu7x:2x2x1
jax: 0.10.0
libtpu: 0.0.40
codegen_flags: <defaults>
</compile_context>

<pallas_src>
import jax
import jax.numpy as jnp
from jax.experimental import pallas as pl
from jax.experimental.pallas import tpu as pltpu


def _make_channel_bound_kernel(exponent):
    def kernel(x_ref, o_ref):
        # x_ref / o_ref: (rows, H*W) tile; each row is one (batch, channel) pair.
        v = x_ref[...].astype(jnp.float32)
        if exponent == 1.0:
            # polarization == 0: exact identity, matches torch.pow(x, 1.0).
            tx = v
        else:
            # Fractional exponent: same NaN-on-negative semantics as torch.pow.
            # TODO(synk): an odd-real-root variant (sign(x)*|x|**e) plus a
            # max(|x|)-based normalizer would avoid 2 EUP transcendentals per
            # element, but it changes the NaN-row semantics of torch.pow, so
            # the literal torch behavior is kept here.
            tx = jnp.power(v, exponent)
        # Per-row (per-channel) abs-max over the flattened spatial axis.
        maxi = jnp.max(jnp.abs(tx), axis=-1, keepdims=True)  # (rows, 1)
        # One exact reciprocal per row, then a cheap VPU multiply.
        # (maxi == 0 -> inf/NaN, matching the PyTorch reference's 0/0 behavior.)
        inv = 1.0 / maxi
        o_ref[...] = (tx * inv).astype(o_ref.dtype)

    return kernel


def _vmem_budget():
    """Returns (scoped-VMEM budget in bytes, assume-multi-TensorCore?)."""
    cap = None
    try:
        info = pltpu.get_tpu_info()
        cap = int(getattr(info, "vmem_capacity_bytes", 0)) or None
    except Exception:
        cap = None  # query unavailable -> conservative (v7x-like) defaults
    if cap is not None and cap >= (128 << 20):
        # v5e / v6e: 128 MiB physical VMEM, 1 TensorCore per chip.
        return 100 << 20, False
    # v7x (64 MiB per TC, 2 TCs) or unknown: cap well below physical VMEM so
    # Mosaic internal scratch and double-buffering keep their headroom.
    return 56 << 20, True


def _choose_rows(nc, hw, dtype, budget_bytes, multi_core):
    """Rows per grid step, respecting sublane packing and the VMEM budget."""
    itemsize = jnp.dtype(dtype).itemsize
    pack = max(8, 32 // max(1, itemsize))  # f32 -> 8, bf16 -> 16, int8/fp8 -> 32
    # VMEM bytes consumed per byte of input tile:
    #   2x(in + out) double buffers in the input dtype  -> 4
    #   ~2 f32-tile compute temporaries                  -> 8 / itemsize
    factor = 4 + max(1, 8 // max(1, itemsize))
    target_bytes = (budget_bytes - (2 << 20)) // factor
    target_bytes = int(min(max(target_bytes, 4 << 20), 16 << 20))

    rows = max(1, target_bytes // max(1, hw * itemsize))
    rows = min(int(rows), nc)
    if rows < nc:
        # Second-to-last block dim must be a multiple of the sublane pack
        # (or the full dim) for clean, unmasked tiling.
        rows = max(pack, (rows // pack) * pack)
        rows = min(rows, nc)
    if multi_core and nc >= 4 * pack:
        # >= 4 roughly equal grid steps so the "parallel" axis shards across
        # both v7x TensorCores without the ragged remainder idling one core.
        rows = min(rows, max(pack, ((nc // 4) // pack) * pack))
    return int(rows)


def channel_bound_ref(x, polarization=0):
    """Pure-JAX reference for correctness checking."""
    exponent = 1.0 / (2 * polarization + 1)
    tx = x if exponent == 1.0 else jnp.power(x, exponent)
    maxi = jnp.max(jnp.abs(tx), axis=(-1, -2), keepdims=True)
    return tx / maxi


def channel_bound(x, polarization=0):
    """Pallas TPU implementation of ChannelBound.forward. x: (N, C, H, W)."""
    N, C, H, W = x.shape
    exponent = 1.0 / (2 * polarization + 1)
    nc, hw = N * C, H * W

    if hw < 128:
        # Tiny spatial dims waste most of every 128-lane vreg and shrink
        # effective tiles; plain XLA wins there, so skip the Pallas path.
        return channel_bound_ref(x, polarization).astype(x.dtype)

    x2 = x.reshape(nc, hw)  # lane-dense last dim = full H*W

    budget, multi_core = _vmem_budget()
    rows = _choose_rows(nc, hw, x2.dtype, budget, multi_core)
    grid = (pl.cdiv(nc, rows),)

    itemsize = x2.dtype.itemsize
    tile_in = rows * hw * itemsize
    tile_f32 = rows * hw * 4
    # 2x(in+out) double buffers + ~2 f32 temporaries + slack, within the
    # per-generation budget (<=56 MiB on v7x, <=100 MiB on v5e/v6e).
    vmem_limit = int(min(max(4 * tile_in + 2 * tile_f32 + (2 << 20), 32 << 20), budget))

    out2 = pl.pallas_call(
        _make_channel_bound_kernel(exponent),
        out_shape=jax.ShapeDtypeStruct((nc, hw), x.dtype),
        grid=grid,
        in_specs=[pl.BlockSpec((rows, hw), lambda i: (i, 0))],
        out_specs=pl.BlockSpec((rows, hw), lambda i: (i, 0)),
        compiler_params=pltpu.CompilerParams(
            dimension_semantics=("parallel",),
            vmem_limit_bytes=vmem_limit,
        ),
    )(x2)

    return out2.reshape(N, C, H, W)


if __name__ == "__main__":
    key = jax.random.PRNGKey(0)
    k0, k1, k2 = jax.random.split(key, 3)

    # 1) Main check: NCHW f32 input, polarization=0 (exact exponent==1 path).
    x = jax.random.normal(k0, (2, 4, 16, 16), dtype=jnp.float32)
    out = jax.block_until_ready(channel_bound(x, polarization=0))
    ref = channel_bound_ref(x, polarization=0)
    assert out.shape == x.shape and out.dtype == x.dtype
    assert jnp.allclose(out, ref, atol=1e-6, rtol=1e-6)

    # 2) Fractional-exponent path (polarization=1) on strictly positive data
    #    (negative inputs give NaN rows in both kernel and torch reference).
    xp = jnp.abs(jax.random.normal(k1, (2, 4, 16, 16), dtype=jnp.float32)) + 0.1
    out_p = jax.block_until_ready(channel_bound(xp, polarization=1))
    ref_p = channel_bound_ref(xp, polarization=1)
    assert jnp.allclose(out_p, ref_p, atol=1e-5, rtol=1e-5)

    # 3) Larger channel count to exercise the multi-step / ragged-grid path.
    xl = jax.random.normal(k2, (4, 16, 32, 32), dtype=jnp.float32)
    out_l = jax.block_until_ready(channel_bound(xl, polarization=0))
    ref_l = channel_bound_ref(xl, polarization=0)
    assert jnp.allclose(out_l, ref_l, atol=1e-6, rtol=1e-6)

    print("KERNEL_OK")
</pallas_src>

<mosaic_0001>
module attributes {stable_mosaic.version = 11 : i64} {
  func.func @kernel(%arg0: i32, %arg1: memref<8x256xf32, #tpu.memory_space<vmem>>, %arg2: memref<8x256xf32, #tpu.memory_space<vmem>>) attributes {dimension_semantics = [#tpu.dimension_semantics<parallel>], iteration_bounds = array<i64: 1>, scalar_prefetch = 0 : i64, scratch_operands = 0 : i64, tpu.core_type = #tpu.core_type<tc>, window_params = [{transform_indices = @transform_0, window_bounds = array<i64: 8, 256>}, {transform_indices = @transform_1, window_bounds = array<i64: 8, 256>}]} {
    %c0 = arith.constant 0 : index
    %c0_0 = arith.constant 0 : index
    %0 = vector.load %arg1[%c0, %c0_0] : memref<8x256xf32, #tpu.memory_space<vmem>>, vector<8x256xf32>
    %1 = math.absf %0 : vector<8x256xf32>
    %cst = arith.constant dense<0xFF800000> : vector<8xf32>
    %2 = vector.multi_reduction <maximumf>, %1, %cst [1] : vector<8x256xf32> to vector<8xf32>
    %3 = vector.shape_cast %2 : vector<8xf32> to vector<8x1xf32>
    %cst_1 = arith.constant 1.000000e+00 : f32
    %4 = vector.broadcast %cst_1 : f32 to vector<8x1xf32>
    %5 = arith.divf %4, %3 : vector<8x1xf32>
    %6 = vector.broadcast %5 : vector<8x1xf32> to vector<8x256xf32>
    %7 = arith.mulf %0, %6 : vector<8x256xf32>
    %c0_2 = arith.constant 0 : index
    %c0_3 = arith.constant 0 : index
    %8 = vector.load %arg2[%c0_2, %c0_3] : memref<8x256xf32, #tpu.memory_space<vmem>>, vector<8x256xf32>
    tpu.vector_store %arg2[%c0_2, %c0_3], %7 {strides = array<i32>} : memref<8x256xf32, #tpu.memory_space<vmem>>, vector<8x256xf32>,
    return
  }
  func.func @transform_0(%arg0: i32) -> (i32, i32) {
    %c0_i32 = arith.constant 0 : i32
    %c0_i32_0 = arith.constant 0 : i32
    return %arg0, %c0_i32 : i32, i32
  }
  func.func @transform_1(%arg0: i32) -> (i32, i32) {
    %c0_i32 = arith.constant 0 : i32
    %c0_i32_0 = arith.constant 0 : i32
    return %arg0, %c0_i32 : i32, i32
  }
}

</mosaic_0001>

<bundles_post_ra>
// kernel: tpu_custom_call.1
= control target key start
LH: loop header
LB: loop body
LE: loop exit
PB: predicated region body
PF: predicated region fallthrough
CT: control target
= control target key end

     0   :  { %6 = vsyncpa [#allocation3], 0  ;;  %s137_s0 = inlined_call_operand.hbm [shape: f32[8,256], index: 0, kind: input, shape index: {}]   ;;  %s138_s1 = inlined_call_operand.hbm [shape: f32[8,256], index: 1, kind: output, shape index: {}]  }
   0x1   :  { %7 = vsyncpa [#allocation4], 0  ;;  %s101_s6 = smov [#allocation2]   ;;  %s53_s10 = scalar_lea.hbm %s137_s0, 256 }
   0x2   :  { %s14_s7 = sshll.u32 %s101_s6, 4  ;;  %p54_p0 = scmp.ne.s32.totalorder %s137_s0, %s53_s10  ;;  %s15_s7 = int_to_ptr.vmem [resolvable:$true] %s14_s7 }
   0x3   :  { %p57_p1 = scmp.lt.u32.totalorder %s53_s10, %s137_s0 }
   0x5   :  { %p59_p2 = pnand %p57_p1, %p54_p0 }
   0x7   :  { %62 = shalt.err (!%p59_p2)
}
   0x8   :  { %s63_s15 = scalar_lea.vmem %s15_s7, 256  ;;  %p68_p4 = scmp.lt.s32.totalorder %s15_s7, %s15_s7 }
   0x9   :  { %p64_p3 = scmp.ne.s32.totalorder %s15_s7, %s63_s15  ;;  %p69_p5 = scmp.lt.s32.totalorder %s63_s15, %s63_s15 }
   0xb   :  { %p70_p6 = por %p69_p5, %p68_p4 }
   0xd   :  { %p71_p7 = pnand %p70_p6, %p64_p3 }
   0xf   :  { %74 = shalt.err (!%p71_p7)
}
  0x10   :  { %17 = dma.hbm_to_vmem [thread:$0]  %s137_s0, 256, %s15_s7, [#allocation3]  }
  0x11   :  { %97 = dma.done.wait [#allocation3], 256  }
  0x12   :  { %98 = vsyncadd [#allocation3], 4294967040  ;;  %v21_v0 = vld [vmem:[#allocation2] sm:$0xff]  ;;  %v22_v1 = vld [vmem:[#allocation2 + $0x8] sm:$0xff]  ;;  %s102_s18 = smov [#allocation5]  }
  0x13   :  { %v23_v2 = vand.u32 2147483647, %v21_v0  ;;  %v24_v3 = vand.u32 2147483647, %v22_v1  ;;  %s40_s19 = sshll.u32 %s102_s18, 4  ;;  %s41_s19 = int_to_ptr.vmem [resolvable:$true] %s40_s19 }
  0x14   :  { %s75_s20 = scalar_lea.vmem %s41_s19, 256  ;;  %p80_p9 = scmp.lt.s32.totalorder %s41_s19, %s41_s19 }
  0x15   :  { %v25_v4 = vmax.f32.f32 %v23_v2, %v24_v3  ;;  %p76_p8 = scmp.ne.s32.totalorder %s41_s19, %s75_s20  ;;  %p81_p10 = scmp.lt.s32.totalorder %s75_s20, %s75_s20 }
  0x17   :  { %26 = vmax.xlane.f32.xlu0 %v25_v4  ;;  %p82_p11 = por %p81_p10, %p80_p9 }
  0x19   :  { %p83_p12 = pnand %p82_p11, %p76_p8 }
  0xa4   :  { %v27_v5 = vpop.xlane.xlu0 %26 }
  0xa5   :  { %51 = vrcp.f32 %v27_v5 }
  0xaf   :  { %v52_v6 = vpop.eup %51 }
  0xb0   :  { %v30_v7 = vmul.f32 %v52_v6, %v21_v0  ;;  %v31_v8 = vmul.f32 %v52_v6, %v22_v1 }
  0xb2   :  { %32 = vst [vmem:[#allocation5] sm:$0xff] %v30_v7  ;;  %33 = vst [vmem:[#allocation5 + $0x8] sm:$0xff] %v31_v8 }
  0xb3   :  { %86 = shalt.err (!%p83_p12)
}
  0xb4   :  { %s87_s22 = scalar_lea.hbm %s138_s1, 256 }
  0xb5   :  { %p88_p13 = scmp.ne.s32.totalorder %s138_s1, %s87_s22  ;;  %p91_p0 = scmp.lt.u32.totalorder %s87_s22, %s138_s1 }
  0xb7   :  { %p93_p1 = pnand %p91_p0, %p88_p13 }
  0xb9   :  { %96 = shalt.err (!%p93_p1)
}
  0xba   :  { %43 = dma.vmem_to_hbm [thread:$0]  %s41_s19, 256, %s138_s1, [#allocation4]  }
  0xbb   :  { %99 = dma.done.wait [#allocation4], 256  }
  0xbc   :  { %100 = vsyncadd [#allocation4], 4294967040 }
  0xbd   :  { %47 = vsyncpa [#allocation3], 1 }
  0xbe   :  { %48 = vsyncpa [#allocation4], 1 }

</bundles_post_ra>
